<compile_context>
chip_gen: v6e
topology: v6e:2x2x1
jax: 0.10.0
libtpu: 0.0.40
codegen_flags: <defaults>
</compile_context>

<pallas_src>
import math
from functools import partial

import numpy as np
import jax
import jax.numpy as jnp
from jax.experimental import pallas as pl
from jax.experimental.pallas import tpu as pltpu


# ----------------------------------------------------------------------------
# Irrep bookkeeping (static python, mirrors e3nn `rs` / `o3` helpers)
# ----------------------------------------------------------------------------
def rs_dim(Rs):
    return sum(m * (2 * l + 1) for m, l, _ in Rs)


def mul_dim(Rs):
    return sum(m for m, _, _ in Rs)


def _offsets(Rs):
    offs, o = [], 0
    for m, l, _ in Rs:
        offs.append(o)
        o += m * (2 * l + 1)
    return offs


def selection_rule_in_out_sh(l_in, p_in, l_out, p_out, lmax):
    return [l for l in range(abs(l_in - l_out), l_in + l_out + 1)
            if l <= lmax and p_out == p_in * (-1) ** l]


def haslinearpath(Rs, l_out, p_out):
    for mul_in, l_in, p_in in Rs:
        if mul_in == 0:
            continue
        for lf in range(abs(l_in - l_out), l_in + l_out + 1):
            if p_out == p_in * (-1) ** lf:
                return True
    return False


def wigner_3j(l_out, l_in, l_f):
    # real-basis coupling coefficients; l=1 components ordered (y, z, x)
    if (l_out, l_in, l_f) == (0, 0, 0):
        return np.ones((1, 1, 1), np.float32)
    if (l_out, l_in, l_f) == (1, 0, 1):
        return (np.eye(3, dtype=np.float32) / math.sqrt(3.0)).reshape(3, 1, 3)
    if (l_out, l_in, l_f) == (0, 1, 1):
        return (np.eye(3, dtype=np.float32) / math.sqrt(3.0)).reshape(1, 3, 3)
    if (l_out, l_in, l_f) == (1, 1, 0):
        return (np.eye(3, dtype=np.float32) / math.sqrt(3.0)).reshape(3, 3, 1)
    if (l_out, l_in, l_f) == (1, 1, 1):
        eps = np.zeros((3, 3, 3), np.float32)
        eps[0, 1, 2] = eps[1, 2, 0] = eps[2, 0, 1] = 1.0
        eps[0, 2, 1] = eps[2, 1, 0] = eps[1, 0, 2] = -1.0
        return eps / math.sqrt(6.0)
    # TODO(synk): general Wigner 3j beyond lmax=1 not implemented.
    raise NotImplementedError(f"wigner_3j{(l_out, l_in, l_f)}")


# ----------------------------------------------------------------------------
# Radial model + spherical harmonics (plain-JAX glue, like e3nn GaussianRadialModel)
# ----------------------------------------------------------------------------
def swish(x):
    return x * jax.nn.sigmoid(x)


def spherical_harmonics(r, radii, lmax):
    # 'component' normalization (||Y_l||^2 = 2l+1); Y_0 = 1 ; l=1 ordered (y, z, x)
    ys = {0: jnp.ones(r.shape[:-1] + (1,), r.dtype)}
    if lmax >= 1:
        safe = jnp.where(radii > 1e-8, radii, 1.0)[..., None]
        u = r / safe
        y1 = math.sqrt(3.0) * jnp.stack([u[..., 1], u[..., 2], u[..., 0]], axis=-1)
        # TODO(synk): e3nn's exact r=0 self-interaction special case; here Y_{l>0}(0)=0.
        ys[1] = jnp.where((radii > 1e-8)[..., None], y1, 0.0)
    return ys


def gaussian_basis(radii, number_of_basis, min_radius, max_radius):
    centers = jnp.linspace(min_radius, max_radius, number_of_basis)
    sigma = 0.8 * (max_radius - min_radius) / (number_of_basis - 1)
    return jnp.exp(-(((radii[..., None] - centers) / sigma) ** 2)) / 1.423085244900308


def init_radial_weights(key, number_of_basis, h, n_hidden, out_dim):
    dims = [number_of_basis] + [h] * n_hidden + [out_dim]
    ws = []
    for d_in, d_out in zip(dims[:-1], dims[1:]):
        key, sub = jax.random.split(key)
        ws.append(jax.random.normal(sub, (d_in, d_out), jnp.float32))
    return ws


def radial_mlp(ws, x):
    # e3nn-style weight-normalized FC: y = act(x @ W / sqrt(fan_in)); last layer linear
    for i, w in enumerate(ws):
        x = jnp.dot(x, w) / math.sqrt(w.shape[0])
        if i < len(ws) - 1:
            x = swish(x)
    return x


# ----------------------------------------------------------------------------
# Equivariant kernel paths + assembly (glue): K[z, b*d_in + j, a*d_out + i]
# ----------------------------------------------------------------------------
def build_paths(Rs_in, Rs_out, lmax):
    paths, n_radial, out_off, fan = [], 0, 0, {}
    for mul_out, l_out, p_out in Rs_out:
        in_off = 0
        for mul_in, l_in, p_in in Rs_in:
            for l_f in selection_rule_in_out_sh(l_in, p_in, l_out, p_out, lmax):
                paths.append(dict(out_off=out_off, mul_out=mul_out, l_out=l_out,
                                  in_off=in_off, mul_in=mul_in, l_in=l_in,
                                  l_f=l_f, r_off=n_radial))
                n_radial += mul_out * mul_in
                fan[out_off] = fan.get(out_off, 0) + mul_in
            in_off += mul_in * (2 * l_in + 1)
        out_off += mul_out * (2 * l_out + 1)
    for p in paths:
        # TODO(synk): matches e3nn 'component' normalization only up to exact constants.
        p['norm'] = math.sqrt(2 * p['l_out'] + 1) / math.sqrt(fan[p['out_off']])
    return paths, n_radial


def build_edge_kernel(geometry, radial_ws, paths, Rs_in, Rs_out, cfg, NKp, NMp,
                      k_dtype=jnp.bfloat16):
    """Assemble the per-batch equivariant kernel DIRECTLY in the flattened, padded,
    compute-dtype layout K[z, b*d_in + j, a*d_out + i] read by the Pallas contraction."""
    B, N, _ = geometry.shape
    r = geometry[:, None, :, :] - geometry[:, :, None, :]          # [B, a, b, 3]
    radii = jnp.linalg.norm(r, axis=-1)
    ys = spherical_harmonics(r, radii, cfg['lmax'])
    basis = gaussian_basis(radii, cfg['number_of_basis'], cfg['min_radius'], cfg['max_radius'])
    R = radial_mlp(radial_ws, basis)                                 # [B, a, b, n_radial]
    d_in, d_out = rs_dim(Rs_in), rs_dim(Rs_out)

    # C (x) Y contraction cache, shared by paths with the same (l_out, l_in, l_f)
    cy_cache = {}

    def _cy(l_out, l_in, l_f):
        key = (l_out, l_in, l_f)
        if key not in cy_cache:
            C = jnp.asarray(wigner_3j(l_out, l_in, l_f))
            cy_cache[key] = jnp.einsum('ijm,zabm->zabij', C, ys[l_f])
        return cy_cache[key]

    # per-(in-irrep, out-irrep) summed blocks in [z, b, v, j, a, u, i] order (f32, small)
    blocks = {}
    for p in paths:
        rp = R[..., p['r_off']:p['r_off'] + p['mul_out'] * p['mul_in']]
        rp = rp.reshape(B, N, N, p['mul_out'], p['mul_in'])          # [z, a, b, u, v]
        blk = p['norm'] * jnp.einsum('zabuv,zabij->zbvjaui',
                                     rp, _cy(p['l_out'], p['l_in'], p['l_f']))
        key = (p['in_off'], p['out_off'])
        blocks[key] = blk if key not in blocks else blocks[key] + blk

    # place blocks (cast to k_dtype) with concatenation: rows = in irreps, cols = out irreps
    in_offs, out_offs = _offsets(Rs_in), _offsets(Rs_out)
    row_blocks = []
    for (m_in, l_in, _), ioff in zip(Rs_in, in_offs):
        di = m_in * (2 * l_in + 1)
        col_blocks = []
        for (m_out, l_out, _), ooff in zip(Rs_out, out_offs):
            do = m_out * (2 * l_out + 1)
            blk = blocks.get((ioff, ooff))
            if blk is None:
                col_blocks.append(jnp.zeros((B, N, di, N, do), k_dtype))
            else:
                col_blocks.append(blk.reshape(B, N, di, N, do).astype(k_dtype))
        row_blocks.append(col_blocks[0] if len(col_blocks) == 1
                          else jnp.concatenate(col_blocks, axis=4))
    K = row_blocks[0] if len(row_blocks) == 1 else jnp.concatenate(row_blocks, axis=2)
    K = K.reshape(B, N * d_in, N * d_out)
    if NKp != N * d_in or NMp != N * d_out:
        K = jnp.pad(K, ((0, 0), (0, NKp - N * d_in), (0, NMp - N * d_out)))
    return K


# ----------------------------------------------------------------------------
# Conv tiling plan (generation-aware)
# ----------------------------------------------------------------------------
def _round_up(x, m):
    return ((x + m - 1) // m) * m


def _plan_dim(d, unit, max_tile):
    """Pick (tile, padded_dim): single full-width block if it fits, else the smallest
    number of `unit`-aligned tiles (minimal padding)."""
    if d <= max_tile:
        return d, d
    n = -(-d // max_tile)
    t = _round_up(-(-d // n), unit)
    return t, n * t


def _vmem_bytes():
    try:
        return int(pltpu.get_tpu_info().vmem_capacity_bytes)
    except Exception:
        return 64 * 1024 * 1024       # conservative (v7x-sized) fallback


def plan_conv(B, NK, NM, itemsize):
    """v5e/v6e (128 MiB VMEM): 16 MiB K blocks, 96 MiB scoped limit.
       v7x (64 MiB VMEM/TC):     8 MiB K blocks, 48 MiB scoped limit, and >=2 parallel
                                 output tiles when B == 1 so both TensorCores work."""
    vmem = _vmem_bytes()
    big = vmem >= 100 * (1 << 20)
    blk_bytes = (16 if big else 8) << 20
    vmem_limit = (96 if big else 48) << 20
    max_tm = 4096 if big else 2048
    max_tk = max(128, ((blk_bytes // (max_tm * itemsize)) // 128) * 128)

    tm, NMp = _plan_dim(NM, 128, max_tm)     # lane (output) dim: 128-aligned tiles
    tk, NKp = _plan_dim(NK, 128, max_tk)     # reduction dim: 128-aligned (F lane constraint)
    nm, nk = NMp // tm, NKp // tk

    # v7x has 2 TensorCores: guarantee >= 2 parallel blocks for single-batch calls,
    # but only if the extra lane padding this costs is <= ~10% of K traffic.
    if (not big) and B == 1 and nm == 1 and NM >= 256:
        tm2 = _round_up(-(-NM // 2), 128)
        if (2 * tm2 - NMp) * 10 <= NMp:
            tm, NMp, nm = tm2, 2 * tm2, 2

    return dict(NK=NK, NM=NM, NKp=NKp, NMp=NMp, tk=tk, tm=tm, nk=nk, nm=nm,
                vmem_limit=vmem_limit)


# ----------------------------------------------------------------------------
# Pallas kernel 1: Convolution contraction  F[z,1,NKp] @ K[z,NKp,NMp]
#   grid = (batch, output-tile, reduction-tile); the resident f32 output block IS
#   the accumulator (pl.when zero-init at k==0); bf16 streaming of K/F on the MXU.
# ----------------------------------------------------------------------------
def _conv_kernel(f_ref, k_ref, o_ref):
    @pl.when(pl.program_id(2) == 0)
    def _init():
        o_ref[...] = jnp.zeros_like(o_ref)

    # (1, tk) @ (tk, tm) -> (1, tm), f32 accumulation into the resident output block
    o_ref[0] = o_ref[0] + jnp.dot(f_ref[0], k_ref[0],
                                  preferred_element_type=jnp.float32)


def conv_pallas(K, feats, n_norm, plan, compute_dtype=jnp.bfloat16):
    """K: [B, NKp, NMp] (already compute_dtype + padded); feats: [B, N, d_in]."""
    B, NKp, NMp = K.shape
    _, N, d_in = feats.shape
    NK, NM = plan['NK'], plan['NM']
    assert NK == N * d_in and NKp == plan['NKp'] and NMp == plan['NMp']
    tk, tm = plan['tk'], plan['tm']
    nk, nm = NKp // tk, NMp // tm

    # fold 1/sqrt(n_norm) into the (tiny) feature cast -> no finalize multiply in-kernel
    F = (feats.reshape(B, 1, NK) * (1.0 / math.sqrt(n_norm))).astype(compute_dtype)
    if NKp != NK:
        F = jnp.pad(F, ((0, 0), (0, 0), (0, NKp - NK)))

    itemsize = jnp.dtype(compute_dtype).itemsize
    cost = pl.CostEstimate(
        flops=2 * B * NKp * NMp, transcendentals=0,
        bytes_accessed=B * NKp * NMp * itemsize + B * NKp * itemsize + B * NMp * 4)

    out = pl.pallas_call(
        _conv_kernel,
        out_shape=jax.ShapeDtypeStruct((B, 1, NMp), jnp.float32),
        grid=(B, nm, nk),
        in_specs=[pl.BlockSpec((1, 1, tk), lambda z, m, k: (z, 0, k)),
                  pl.BlockSpec((1, tk, tm), lambda z, m, k: (z, k, m))],
        out_specs=pl.BlockSpec((1, 1, tm), lambda z, m, k: (z, 0, m)),
        compiler_params=pltpu.CompilerParams(
            dimension_semantics=("parallel", "parallel", "arbitrary"),
            vmem_limit_bytes=plan['vmem_limit']),
        cost_estimate=cost,
    )(F, K)

    d_out = NM // N
    return out[:, 0, :NM].reshape(B, N, d_out)


# ----------------------------------------------------------------------------
# Pallas kernel 2: GatedBlockParity activation
#   inputs pre-aligned on the host so the kernel is a single full-width store:
#     v_ref: [scalars | nonscalars]                      (width d_act)
#     g_ref: [scalars | gate-per-nonscalar-channel]      (width d_act)
#   out = tanh(v) on tanh-scalar columns, v * sigmoid(g) everywhere else
#   (swish on even scalars since there g == v; gated nonscalars otherwise).
# ----------------------------------------------------------------------------
def _gated_kernel(v_ref, g_ref, o_ref, *, ns_swish, ns_tanh):
    v = v_ref[...]
    sig = v * jax.nn.sigmoid(g_ref[...])
    if ns_tanh == 0:
        out = sig
    else:
        col = jax.lax.broadcasted_iota(jnp.int32, v.shape, 1)
        is_tanh = (col >= ns_swish) & (col < ns_swish + ns_tanh)
        out = jnp.where(is_tanh, jnp.tanh(v), sig)
    o_ref[...] = out.astype(o_ref.dtype)


def gated_act_pallas(x, act_cfg, chan_gate_idx):
    B, N, d_in = x.shape
    ns_swish, ns_tanh = act_cfg['ns_swish'], act_cfg['ns_tanh']
    n_gates, d_ns = act_cfg['n_gates'], act_cfg['d_ns']
    n_s = ns_swish + ns_tanh
    d_act = n_s + d_ns
    assert d_in == n_s + n_gates + d_ns and d_act >= 1

    rows = B * N
    xf = x.reshape(rows, d_in)
    scal = xf[:, :n_s]
    if n_gates:
        nonscal = xf[:, n_s + n_gates:]
        gate_for_chan = jnp.take(xf[:, n_s:n_s + n_gates], chan_gate_idx, axis=-1)
        v = jnp.concatenate([scal, nonscal], axis=-1)
        g = jnp.concatenate([scal, gate_for_chan], axis=-1)
    else:
        v, g = scal, scal

    # big row tiles (~2 MiB / block), padded remainder
    max_rows = max(8, ((2 * 1024 * 1024) // max(1, 4 * d_act)) // 8 * 8)
    tile = min(max_rows, 4096, _round_up(rows, 8))
    rows_p = _round_up(rows, tile)
    if rows_p != rows:
        v = jnp.pad(v, ((0, rows_p - rows), (0, 0)))
        g = jnp.pad(g, ((0, rows_p - rows), (0, 0)))

    out = pl.pallas_call(
        partial(_gated_kernel, ns_swish=ns_swish, ns_tanh=ns_tanh),
        out_shape=jax.ShapeDtypeStruct((rows_p, d_act), jnp.float32),
        grid=(rows_p // tile,),
        in_specs=[pl.BlockSpec((tile, d_act), lambda i: (i, 0)),
                  pl.BlockSpec((tile, d_act), lambda i: (i, 0))],
        out_specs=pl.BlockSpec((tile, d_act), lambda i: (i, 0)),
        compiler_params=pltpu.CompilerParams(dimension_semantics=("parallel",)),
    )(v, g)

    if rows_p != rows:
        out = out[:rows]
    return out.reshape(B, N, d_act)


# ----------------------------------------------------------------------------
# Network construction (mirrors GatedConvParityNetwork.__init__, feature_product=False)
# ----------------------------------------------------------------------------
def gate_channel_index(nonscalars):
    idx, g = [], 0
    for m, l, _ in nonscalars:
        for _ in range(m):
            idx.extend([g] * (2 * l + 1))
            g += 1
    if not idx:
        return jnp.zeros((0,), jnp.int32)
    return jnp.asarray(np.asarray(idx, np.int32))


def build_network(key, Rs_in, mul, Rs_out, lmax, layers, cfg):
    net, Rs = [], list(Rs_in)
    for _ in range(layers):
        scalars = [(mul, 0, p) for p in (+1, -1) if haslinearpath(Rs, 0, p)]
        act_scalars = [(m, 'swish' if p == 1 else 'tanh') for m, _, p in scalars]
        nonscalars = [(mul, l, p) for l in range(1, lmax + 1) for p in (+1, -1)
                      if haslinearpath(Rs, l, p)]
        n_gates = mul_dim(nonscalars)
        gates = [(n_gates, 0, +1)] if n_gates else []
        Rs_act_in = scalars + gates + nonscalars
        Rs_act_out = scalars + nonscalars
        paths, n_radial = build_paths(Rs, Rs_act_in, lmax)
        key, sub = jax.random.split(key)
        rw = init_radial_weights(sub, cfg['number_of_basis'], 100, cfg['radial_layers'], n_radial)
        net.append(dict(kind='conv+gate', Rs_in=list(Rs), Rs_out_conv=Rs_act_in,
                        paths=paths, radial_ws=rw,
                        act=dict(ns_swish=sum(m for m, a in act_scalars if a == 'swish'),
                                 ns_tanh=sum(m for m, a in act_scalars if a == 'tanh'),
                                 n_gates=n_gates,
                                 d_ns=rs_dim(nonscalars)),
                        gate_idx=gate_channel_index(nonscalars)))
        Rs = Rs_act_out
    # final conv (allow_unused_inputs=True: unused input irreps simply get no path)
    paths, n_radial = build_paths(Rs, Rs_out, lmax)
    key, sub = jax.random.split(key)
    rw = init_radial_weights(sub, cfg['number_of_basis'], 100, cfg['radial_layers'], n_radial)
    net.append(dict(kind='conv', Rs_in=list(Rs), Rs_out_conv=list(Rs_out),
                    paths=paths, radial_ws=rw))
    return net
    # TODO(synk): feature_product=True branch (LearnableTensorSquare) not implemented.


def forward(net, features, geometry, cfg, compute_dtype=jnp.bfloat16):
    # compute_dtype controls the K/F streaming precision (f32 accumulation regardless);
    # pass jnp.float32 for bit-closer agreement with the f32 PyTorch reference.
    B, N, _ = geometry.shape
    n_norm = N                      # kwargs['n_norm'] = args[0].shape[-2]
    itemsize = jnp.dtype(compute_dtype).itemsize
    out = features
    for layer in net:
        d_in, d_out = rs_dim(layer['Rs_in']), rs_dim(layer['Rs_out_conv'])
        plan = plan_conv(B, N * d_in, N * d_out, itemsize)
        K = build_edge_kernel(geometry, layer['radial_ws'], layer['paths'],
                              layer['Rs_in'], layer['Rs_out_conv'], cfg,
                              plan['NKp'], plan['NMp'], compute_dtype)
        out = conv_pallas(K, out, n_norm, plan, compute_dtype)
        if layer['kind'] == 'conv+gate':
            out = gated_act_pallas(out, layer['act'], layer['gate_idx'])
    return out


# ----------------------------------------------------------------------------
if __name__ == "__main__":
    B, N = 2, 8
    mul, lmax, layers = 4, 1, 2
    Rs_in = [(2, 0, +1)]
    Rs_out = [(2, 0, +1)]
    cfg = dict(lmax=lmax, max_radius=1.0, min_radius=0.0,
               number_of_basis=3, radial_layers=3)

    key = jax.random.PRNGKey(0)
    k_geo, k_feat, k_net = jax.random.split(key, 3)
    geometry = jax.random.uniform(k_geo, (B, N, 3), jnp.float32, minval=0.0, maxval=0.6)
    features = jax.random.normal(k_feat, (B, N, rs_dim(Rs_in)), jnp.float32)

    net = build_network(k_net, Rs_in, mul, Rs_out, lmax, layers, cfg)
    out = forward(net, features, geometry, cfg)
    out = jax.block_until_ready(out)

    assert out.shape == (B, N, rs_dim(Rs_out)), out.shape
    assert bool(jnp.all(jnp.isfinite(out)))
    print("KERNEL_OK")
</pallas_src>

<mosaic_0001>
module attributes {stable_mosaic.version = 11 : i64} {
  func.func @_conv_kernel(%arg0: i32, %arg1: i32, %arg2: i32, %arg3: memref<1x1x16xbf16, #tpu.memory_space<vmem>>, %arg4: memref<1x16x160xbf16, #tpu.memory_space<vmem>>, %arg5: memref<1x1x160xf32, #tpu.memory_space<vmem>>) attributes {dimension_semantics = [#tpu.dimension_semantics<parallel>, #tpu.dimension_semantics<parallel>, #tpu.dimension_semantics<arbitrary>], iteration_bounds = array<i64: 2, 1, 1>, scalar_prefetch = 0 : i64, scratch_operands = 0 : i64, tpu.core_type = #tpu.core_type<tc>, window_params = [{transform_indices = @transform_0, window_bounds = array<i64: 1, 1, 16>}, {transform_indices = @transform_1, window_bounds = array<i64: 1, 16, 160>}, {transform_indices = @transform_2, window_bounds = array<i64: 1, 1, 160>}]} {
    %c0_i32 = arith.constant 0 : i32
    %0 = arith.cmpi eq, %arg2, %c0_i32 : i32
    %1 = arith.extui %0 : i1 to i32
    %c0_i32_0 = arith.constant 0 : i32
    %2 = arith.cmpi ne, %1, %c0_i32_0 : i32
    scf.if %2 {
      %cst_12 = arith.constant 0.000000e+00 : f32
      %14 = vector.broadcast %cst_12 : f32 to vector<1x1x160xf32>
      %c0_13 = arith.constant 0 : index
      %c0_14 = arith.constant 0 : index
      %c0_15 = arith.constant 0 : index
      %15 = vector.load %arg5[%c0_13, %c0_14, %c0_15] : memref<1x1x160xf32, #tpu.memory_space<vmem>>, vector<1x1x160xf32>
      tpu.vector_store %arg5[%c0_13, %c0_14, %c0_15], %14 {strides = array<i32>} : memref<1x1x160xf32, #tpu.memory_space<vmem>>, vector<1x1x160xf32>,
    } else {
    }
    %c0 = arith.constant 0 : index
    %c0_1 = arith.constant 0 : index
    %c0_2 = arith.constant 0 : index
    %3 = vector.load %arg5[%c0, %c0_1, %c0_2] : memref<1x1x160xf32, #tpu.memory_space<vmem>>, vector<1x1x160xf32>
    %4 = vector.shape_cast %3 : vector<1x1x160xf32> to vector<1x160xf32>
    %c0_3 = arith.constant 0 : index
    %c0_4 = arith.constant 0 : index
    %c0_5 = arith.constant 0 : index
    %5 = vector.load %arg3[%c0_3, %c0_4, %c0_5] : memref<1x1x16xbf16, #tpu.memory_space<vmem>>, vector<1x1x16xbf16>
    %6 = vector.shape_cast %5 : vector<1x1x16xbf16> to vector<1x16xbf16>
    %c0_6 = arith.constant 0 : index
    %c0_7 = arith.constant 0 : index
    %c0_8 = arith.constant 0 : index
    %7 = vector.load %arg4[%c0_6, %c0_7, %c0_8] : memref<1x16x160xbf16, #tpu.memory_space<vmem>>, vector<1x16x160xbf16>
    %8 = vector.shape_cast %7 : vector<1x16x160xbf16> to vector<16x160xbf16>
    %cst = arith.constant dense<0.000000e+00> : vector<1x160xf32>
    %9 = tpu.matmul %6, %8, %cst {dimension_numbers = #tpu.dot_dimension_numbers<[1], [0], [0], [1], [0, 0, 1, 1], [], []>} : vector<1x16xbf16>, vector<16x160xbf16>, vector<1x160xf32> -> vector<1x160xf32>
    %10 = arith.addf %4, %9 : vector<1x160xf32>
    %c0_9 = arith.constant 0 : index
    %c0_10 = arith.constant 0 : index
    %c0_11 = arith.constant 0 : index
    %11 = vector.load %arg5[%c0_9, %c0_10, %c0_11] : memref<1x1x160xf32, #tpu.memory_space<vmem>>, vector<1x1x160xf32>
    %12 = vector.shape_cast %11 : vector<1x1x160xf32> to vector<1x160xf32>
    %13 = vector.shape_cast %10 : vector<1x160xf32> to vector<1x1x160xf32>
    tpu.vector_store %arg5[%c0_9, %c0_10, %c0_11], %13 {strides = array<i32>} : memref<1x1x160xf32, #tpu.memory_space<vmem>>, vector<1x1x160xf32>,
    return
  }
  func.func @transform_0(%arg0: i32, %arg1: i32, %arg2: i32) -> (i32, i32, i32) {
    %c0_i32 = arith.constant 0 : i32
    %c0_i32_0 = arith.constant 0 : i32
    return %arg0, %c0_i32, %arg2 : i32, i32, i32
  }
  func.func @transform_1(%arg0: i32, %arg1: i32, %arg2: i32) -> (i32, i32, i32) {
    %c0_i32 = arith.constant 0 : i32
    return %arg0, %arg2, %arg1 : i32, i32, i32
  }
  func.func @transform_2(%arg0: i32, %arg1: i32, %arg2: i32) -> (i32, i32, i32) {
    %c0_i32 = arith.constant 0 : i32
    %c0_i32_0 = arith.constant 0 : i32
    return %arg0, %c0_i32, %arg1 : i32, i32, i32
  }
}

</mosaic_0001>

<bundles_post_ra>
// kernel: tpu_custom_call.1
= control target key start
LH: loop header
LB: loop body
LE: loop exit
PB: predicated region body
PF: predicated region fallthrough
CT: control target
= control target key end

     0   :  { %7 = vsyncpa [#allocation3], 0  ;;  %s799_s0 = inlined_call_operand.vmem [shape: bf16[2,1,16], index: 0, kind: input, shape index: {}]   ;;  %s800_s1 = inlined_call_operand.hbm [shape: bf16[2,16,160], index: 1, kind: input, shape index: {}]   ;;  %s801_s2 = inlined_call_operand.hbm [shape: f32[2,1,160], index: 2, kind: output, shape index: {}]  }
   0x1   :  { %9 = vsyncpa [#allocation3 + $0x1], 0 }
   0x2   :  { %10 = vsyncpa [#allocation4], 0 }
   0x3   :  { %12 = vsyncpa [#allocation4 + $0x1], 0  ;;  %s653_s9 = smov 0   ;;  %s655_s10 = smov 0  }
   0x4   :  { %s657_s11 = smov 0   ;;  %s659_s12 = smov 0  }
   0x5   :  { %s661_s13 = smov 0   ;;  %s663_s14 = smov 0  }
   0x6 LB: > { %s431_s15 = sadd.s32 4294967295, %s629_s14   ;;  %s432_s16 = sadd.s32 4294967294, %s629_s14   ;;  %s629_s14 = sphi %s663_s14, %s18_s14   ;;  %s625_s13 = sphi %s661_s13, %s814_s13   ;;  %s621_s12 = sphi %s659_s12, %s813_s12   ;;  %s617_s11 = sphi %s657_s11, %s812_s11   ;;  %s613_s10 = sphi %s655_s10, %s811_s10   ;;  %s609_s9 = sphi %s653_s9, %s810_s9  }
   0x7   : > { %s37_s17 = sadd.s32 1, %s625_s13  ;;  %s76_s18 = sadd.s32 1, %s617_s11 }
   0x8   : > { %p39_p0 = scmp.ge.s32.totalorder %s37_s17, 2  ;;  %p83_p1 = scmp.ne.s32.totalorder %s617_s11, %s613_s10 }
   0x9   : > { %p84_p2 = scmp.eq.s32.totalorder %s629_s14, 0  ;;  %p89_p3 = scmp.ne.s32.totalorder %s613_s10, %s609_s9 }
   0xa   : > { %s816_s17 = smov (%p39_p0, %s37_s17), 0  ;;  %p90_p5 = scmp.eq.s32.totalorder %s431_s15, 0 }
   0xb   : > { %p694_p4 = por %p84_p2, %p83_p1  ;;  %s69_s20 = ssub.s32 %s625_s13, %s816_s17 }
   0xc   : > { %p115_p6 = scmp.eq.s32.totalorder %s431_s15, 1  ;;  %p74_p7 = scmp.eq.s32.totalorder %s69_s20, 0 }
   0xd   : > { %p700_p8 = por %p90_p5, %p89_p3  ;;  %p121_p10 = scmp.eq.s32.totalorder %s432_s16, 1 }
   0xe   : > { %p704_p9 = por %p115_p6, %p83_p1  ;;  %p463_p13 = scmp.lt.s32.totalorder %s629_s14, 2 }
   0xf   : > { %s709_s23 = scalar_select %p74_p7, %s617_s11, %s76_s18  }
  0x10   : > { %p711_p11 = por %p121_p10, %p89_p3  ;;  %s150_s25 = sand.u32 1, %s617_s11  }
  0x11   : > { %s435_s26 = sshll.u32 %s150_s25, 4  ;;  %s449_s27 = sshll.u32 %s625_s13, 8 }
  0x12   : > { %s165_s30 = scalar_lea.hbm %s800_s1, %s449_s27  ;;  %s154_s3 = scalar_lea.vmem [#allocation2], %s435_s26 }
  0x13   : > { %s166_s4 = sshll.u32 %s154_s3, 4  ;;  %p724_p0 = pnand %p463_p13, %p694_p4  ;;  %s167_s4 = int_to_ptr.vmem [resolvable:$true] %s166_s4 }
  0x14   : > { %p438_p1 = scmp.ge.s32.totalorder %s629_s14, 1  ;;  %s151_s6 = scalar_lea.sflag [#allocation3], %s150_s25 }
  0x15   : > { %p523_p2 = pneg %p724_p0  ;;  %s534_s7 = scalar_lea.vmem %s167_s4, 256 }
  0x16   : > { %p535_p3 = scmp.ne.s32.totalorder %s167_s4, %s534_s7  ;;  %s631_s8 = smov [#allocation2]  }
  0x17   : > { %s539_s15 = sshll.u32 %s631_s8, 4  ;;  %s540_s15 = int_to_ptr.vmem [resolvable:$false] %s539_s15 }
  0x18   : > { %p537_p5 = pnand %p535_p3, %p523_p2  ;;  %s541_s16 = scalar_lea.vmem %s540_s15, 512 }
  0x19   : > { %p542_p7 = scmp.lt.s32.totalorder %s167_s4, %s540_s15  ;;  %p543_p10 = scmp.lt.s32.totalorder %s541_s16, %s534_s7 }
  0x1a   : > { %p538_p6 = pneg %p537_p5 }
  0x1b   : > { %p544_p12 = por %p543_p10, %p542_p7 }
  0x1d   : > { %p545_p4 = pnand %p544_p12, %p538_p6 }
  0x1f   : > { %548 = shalt.err (!%p545_p4)
}
  0x20   : > { %s632_s18 = smov 128   ;;  %s633_s19 = smov 8  }
  0x21   : > { %458 = dma.hbm_to_vmem [thread:$0]  (!%p724_p0), %s165_s30, 256, %s167_s4, %s151_s6, %s632_s18, %s632_s18, %s633_s19  }
  0x22   : > { %p174_p13 = scmp.lt.s32.totalorder %s629_s14, 3 }
  0x24   : > { %p175_p2 = pnand %p438_p1, %p174_p13 }
  0x25   : > { %s737_s20 = sand.u32 (!%p175_p2), 1, %s613_s10  }
  0x26   : > { %178 = sbr.rel (%p175_p2) target bundleno = 266 (0x10a), region = 28  ;;  %s439_s25 = sshll.u32 (!%p175_p2), %s737_s20, 4 }
  0x27   : > { %s181_s26 = scalar_lea.sflag (!%p175_p2), [#allocation3], %s737_s20  ;;  %s184_s27 = scalar_lea.vmem (!%p175_p2), [#allocation2], %s439_s25 }
  0x2b   : > { %600 = dma.done.wait (%p700_p8), %s181_s26, 256  }
  0x2c   : > { %602 = vsyncadd (%p700_p8), %s181_s26, 4294967040  ;;  %p211_p12 = scmp.lt.s32.totalorder %s621_s12, 1  ;;  %v634_v0 = vmov 0   ;;  %v518_v1 = vld [vmem:[%s184_s27 + $0x4] ss:$8 sps:$4 sm:$0xff]   ;;  %vm244_vm0 = vcmask 130048   ;;  %v225_v4 = vlaneseq }
  0x2d   : > { %280 = vmatprep.mubr.bf16.mxu0 %v634_v0  ;;  %v520_v2 = vld [vmem:[%s184_s27] ss:$8 sps:$4 sm:$0xff]   ;;  %262 = vmatprep.subr.bf16.mxu0 %v518_v1  ;;  %s440_s21 = sshll.u32 %s737_s20, 1  ;;  %v635_v6 = vmov 0.0   ;;  %v636_v7 = vmov 1966171168  }
  0x2e   : > { %s212_s28 = scalar_select %p211_p12, %s621_s12, 1  ;;  %263 = vmatpush1.bf16.msra.mxu0 %v520_v2  ;;  %vm751_vm1 = vcmp.lt.s32.totalorder %v225_v4, 160  ;;  %v293_v8 = vunpack.c.l.s4 %v636_v7  ;;  %v296_v10 = vshrl.u32 %v225_v4, 7 }
  0x2f   : > { %s210_s4 = scalar_lea.vmem [#allocation5], %s440_s21  ;;  %s450_s5 = sshll.u32 %s621_s12, 5 }
  0x30   : > { %s216_s3 = scalar_lea.vmem %s799_s0, %s212_s28  ;;  %229 = vst.msk [vmem:[%s210_s4] sm:$0x3] %vm751_vm1, %v635_v6  ;;  %v294_v9 = vunpack.c.0.s8 %v293_v8  ;;  %s330_s6 = sshll.u32 %s210_s4, 4  ;;  %s331_s6 = int_to_ptr.vmem [resolvable:$true] %s330_s6 }
  0x31   : > { %v231_v3 = vld [vmem:[%s216_s3] sm:$0x1]  ;;  %s328_s15 = scalar_lea.hbm %s801_s2, %s450_s5  ;;  %s314_s16 = scalar_lea.sflag [#allocation4], %s737_s20 }
  0x32   : > { %443 = vmatmul.mubr.msk.bf16.vlgmr.msra.gmra.mxu0 %vm244_vm0, %v231_v3  ;;  %v297_v12 = vsub.s32 %v294_v9, %v296_v10  ;;  %s549_s18 = scalar_lea.vmem %s331_s6, 32  ;;  %s637_s19 = smov [#allocation5]  }
  0x33   : > { %p550_p8 = scmp.ne.s32.totalorder %s331_s6, %s549_s18  ;;  %s553_s25 = sshll.u32 %s637_s19, 4  ;;  %s554_s25 = int_to_ptr.vmem [resolvable:$false] %s553_s25 }
  0x34   : > { %s555_s12 = scalar_lea.vmem %s554_s25, 64  ;;  %p556_p3 = scmp.lt.s32.totalorder %s331_s6, %s554_s25 }
  0x35   : > { %p551_p0 = pnand %p550_p8, %p704_p9  ;;  %p557_p5 = scmp.lt.s32.totalorder %s555_s12, %s549_s18 }
  0x37   : > { %v230_v17 = vld [vmem:[%s210_s4] sm:$0x3]  ;;  %p552_p1 = pneg %p551_p0  ;;  %p558_p6 = por %p557_p5, %p556_p3 }
  0x39   : > { %p559_p7 = pnand %p558_p6, %p552_p1 }
  0xf2   : > { %v282_v11 = vpop.f32.mrf.mxu0 }
  0xf4   : > { %v284_v13 = vpop.f32.mrf.mxu0 }
  0xf5   : > { %v291_v14 = vcombine.low %v282_v11, %v284_v13 }
  0xf6   : > { %v286_v15 = vpop.f32.mrf.mxu0 }
  0xf7   : > { %v298_v16 = vrot.slane %v291_v14, %v297_v12 }
  0xf8   : > { %v287_v18 = vpop.f32.mrf.mxu0 }
  0xf9   : > { %v305_v19 = vrot.slane %v298_v16, %v297_v12 }
  0xfb   : > { %v307_v20 = vadd.f32 %v305_v19, %v230_v17 }
  0xfd   : > { %312 = vst.msk [vmem:[%s210_s4] sm:$0x3] %vm751_vm1, %v307_v20 }
  0xfe   : > { %562 = shalt.err (!%p559_p7)
}
  0xff   : > { %s563_s26 = scalar_lea.hbm %s328_s15, 32  ;;  %s567_s28 = scalar_lea.hbm %s801_s2, 64 }
 0x100   : > { %p564_p10 = scmp.ne.s32.totalorder %s328_s15, %s563_s26  ;;  %p568_p2 = scmp.lt.s32.totalorder %s328_s15, %s801_s2 }
 0x101   : > { %p569_p12 = scmp.lt.s32.totalorder %s567_s28, %s563_s26 }
 0x102   : > { %p565_p4 = pnand %p564_p10, %p704_p9 }
 0x103   : > { %p570_p8 = por %p569_p12, %p568_p2 }
 0x104   : > { %p566_p13 = pneg %p565_p4 }
 0x106   : > { %p571_p0 = pnand %p570_p8, %p566_p13 }
 0x108   : > { %574 = shalt.err (!%p571_p0)
}
 0x109   : > { %453 = dma.vmem_to_hbm [thread:$0]  (%p704_p9), %s331_s6, 32, %s328_s15, %s314_s16  }
 0x10a PF: > { %s342_s3 = sand.u32 1, %s609_s9   ;;  %p809_p1 = scmp.ge.s32.totalorder %s629_s14, 2 }
 0x10b   : > { %s343_s21 = scalar_lea.sflag [#allocation4], %s342_s3 }
 0x10c   : > { %p460_p3 = pnand %p809_p1, %p711_p11 }
 0x10e   : > { %p461_p5 = pneg %p460_p3 }
 0x110   : > { %604 = dma.done.wait (%p461_p5), %s343_s21, 32  }
 0x111   : > { %606 = vsyncadd (%p461_p5), %s343_s21, 4294967264  ;;  %s18_s14 = sadd.s32 1, %s629_s14   ;;  %s810_s9 = smov %s613_s10 }
 0x112   : > { %p15_p6 = scmp.ge.s32.totalorder %s18_s14, 4   ;;  %s811_s10 = smov %s617_s11 }
 0x113   : > { %s812_s11 = smov %s709_s23  ;;  %s813_s12 = smov %s625_s13 }
 0x114   : > { %s814_s13 = smov %s816_s17  ;;  %17 = sbr.rel (!%p15_p6) target bundleno = 6 (0x6), region = 80 }
 0x119   :  { %348 = vsyncpa [#allocation3], 1 }
 0x11a   :  { %350 = vsyncpa [#allocation3 + $0x1], 1 }
 0x11b   :  { %351 = vsyncpa [#allocation4], 1 }
 0x11c   :  { %353 = vsyncpa [#allocation4 + $0x1], 1 }

</bundles_post_ra>
